<compile_context>
chip_gen: v6e
topology: v6e:2x2x1
jax: 0.10.0
libtpu: 0.0.40
codegen_flags: <defaults>
</compile_context>

<pallas_src>
import jax
import jax.numpy as jnp
from jax.experimental import pallas as pl
from jax.experimental.pallas import tpu as pltpu


def _round_up(x, m):
    return (x + m - 1) // m * m


def _choose_row_tiling(M, cap):
    """Pick (TM, Mp, num_tiles) for the row axis.

    Prefer a TM that divides M exactly (no padding -> the post-kernel reshape
    is a free view), is a multiple of 8 (sublane), and gives >= 2 grid steps
    (so v7x megacore actually shards the row axis).  Fall back to padding only
    if no reasonable divisor exists.
    """
    hi = min(cap, M // 2)
    hi -= hi % 8
    lo = min(hi, 256)                      # don't accept absurdly small tiles
    for tm_c in range(hi, lo - 8, -8):
        if tm_c > 0 and M % tm_c == 0:
            return tm_c, M, M // tm_c
    if M % 8 == 0 and M <= cap:            # single resident tile
        return M, M, 1
    TM = min(cap, _round_up(M, 8))         # fallback: pad rows (post-slice copy)
    Mp = _round_up(M, TM)
    return TM, Mp, Mp // TM


def hybrid_embed_kernel(p_ref, w1_ref, b1_ref, w2_ref, b2_ref, o_ref):
    """Fused: feat = relu(patches @ W1 + b1); out = feat @ W2 + b2 (bf16 store)."""
    feat = jnp.dot(p_ref[...], w1_ref[...],
                   preferred_element_type=jnp.float32)          # f32 accumulate
    feat = jnp.maximum(feat + b1_ref[...], 0.0)                  # f32 epilogue
    out = jnp.dot(feat.astype(w2_ref.dtype), w2_ref[...],
                  preferred_element_type=jnp.float32)
    o_ref[...] = (out + b2_ref[...]).astype(o_ref.dtype)         # bf16 at store


def prepare_params(w1, b1, w2, b2):
    """One-time parameter prep (pad to lane-dense 128 multiples, cast weights
    to bf16).  Hoisted out of the forward so it does not re-run every call."""
    feature_dim = w1.shape[1]
    embed_dim = w2.shape[1]
    Fp = _round_up(feature_dim, 128)
    Ep = _round_up(embed_dim, 128)
    w1_p = jnp.pad(w1.astype(jnp.bfloat16), ((0, 0), (0, Fp - feature_dim)))
    b1_p = jnp.pad(jnp.asarray(b1, jnp.float32).reshape(1, -1),
                   ((0, 0), (0, Fp - feature_dim)))
    w2_p = jnp.pad(w2.astype(jnp.bfloat16),
                   ((0, Fp - feature_dim), (0, Ep - embed_dim)))
    b2_p = jnp.pad(jnp.asarray(b2, jnp.float32).reshape(1, -1),
                   ((0, 0), (0, Ep - embed_dim)))
    return w1_p, b1_p, w2_p, b2_p


def hybrid_embed_forward(x_nchw, w1_p, b1_p, w2_p, b2_p, *, embed_dim, tm=1024):
    """x_nchw: (B, Cin, H, W). Returns (B, num_patches, embed_dim) bf16."""
    B, C, H, W = x_nchw.shape
    Hf, Wf = H // 2, W // 2
    patch_dim = 4 * C
    Fp = w1_p.shape[1]
    Ep = w2_p.shape[1]

    # im2col for the 2x2/stride-2 conv stem (stride == kernel -> pure reshape).
    # Cast to bf16 FIRST so the NCHW->NHWC->patch shuffle moves half the bytes.
    x = x_nchw.astype(jnp.bfloat16)
    x = jnp.transpose(x, (0, 2, 3, 1))                             # (B, H, W, C)
    patches = (x.reshape(B, Hf, 2, Wf, 2, C)
                 .transpose(0, 1, 3, 2, 4, 5)
                 .reshape(B * Hf * Wf, patch_dim))                 # (M, 4*Cin) bf16
    M = B * Hf * Wf

    TM, Mp, num_tiles = _choose_row_tiling(M, tm)
    if Mp != M:
        patches = jnp.pad(patches, ((0, Mp - M), (0, 0)))

    flops = 2 * Mp * (patch_dim * Fp + Fp * Ep)
    bytes_accessed = (Mp * patch_dim * 2                 # bf16 patches in
                      + patch_dim * Fp * 2 + Fp * Ep * 2 # bf16 weights
                      + (Fp + Ep) * 4                    # f32 biases
                      + Mp * Ep * 2)                     # bf16 output

    out = pl.pallas_call(
        hybrid_embed_kernel,
        out_shape=jax.ShapeDtypeStruct((Mp, Ep), jnp.bfloat16),
        grid=(num_tiles,),
        in_specs=[
            pl.BlockSpec((TM, patch_dim), lambda i: (i, 0)),   # row tiles
            pl.BlockSpec((patch_dim, Fp), lambda i: (0, 0)),   # W1: VMEM-resident
            pl.BlockSpec((1, Fp), lambda i: (0, 0)),           # b1
            pl.BlockSpec((Fp, Ep), lambda i: (0, 0)),          # W2: VMEM-resident
            pl.BlockSpec((1, Ep), lambda i: (0, 0)),           # b2
        ],
        out_specs=pl.BlockSpec((TM, Ep), lambda i: (i, 0)),
        compiler_params=pltpu.CompilerParams(
            dimension_semantics=("parallel",),   # row tiles are independent
            vmem_limit_bytes=48 << 20),          # safe on v7x, ample headroom
        cost_estimate=pl.CostEstimate(
            flops=flops, transcendentals=0, bytes_accessed=bytes_accessed),
    )(patches, w1_p, b1_p, w2_p, b2_p)

    # Strip padding (only when there is any) and restore (B, num_patches, E).
    if Mp != M or Ep != embed_dim:
        out = out[:M, :embed_dim]
    return out.reshape(B, Hf * Wf, embed_dim)


def reference_forward(x_nchw, w1, b1, w2, b2):
    """Plain-JAX f32 reference mirroring the PyTorch semantics."""
    B, C, H, W = x_nchw.shape
    Hf, Wf = H // 2, W // 2
    x = jnp.transpose(x_nchw, (0, 2, 3, 1))
    patches = (x.reshape(B, Hf, 2, Wf, 2, C)
                 .transpose(0, 1, 3, 2, 4, 5)
                 .reshape(B, Hf * Wf, 4 * C))
    feat = jnp.maximum(patches @ w1 + b1, 0.0)   # backbone output (B, HW, Cf)
    return feat @ w2 + b2                        # self.proj: Linear(Cf, embed_dim)


if __name__ == "__main__":
    # Small shapes consistent with the module's forward:
    #   batch=2, in_chans=4, img 16x16 -> feature map 8x8, feature_dim=8,
    #   num_patches=64, embed_dim=32.
    B, Cin, H, W = 2, 4, 16, 16
    feature_dim, embed_dim = 8, 32
    patch_dim = 4 * Cin

    key = jax.random.PRNGKey(0)
    kx, k1, kb1, k2, kb2 = jax.random.split(key, 5)

    x = jax.random.normal(kx, (B, Cin, H, W), dtype=jnp.float32)

    # Deterministic parameter init (synthetic; no checkpoint load).
    w1 = jax.random.normal(k1, (patch_dim, feature_dim), jnp.float32) * 0.1  # conv stem
    b1 = jax.random.normal(kb1, (feature_dim,), jnp.float32) * 0.1
    w2 = jax.random.normal(k2, (feature_dim, embed_dim), jnp.float32) * 0.1  # self.proj
    b2 = jax.random.normal(kb2, (embed_dim,), jnp.float32) * 0.1

    # One-time parameter prep (pad + bf16 cast), outside the per-call forward.
    w1_p, b1_p, w2_p, b2_p = jax.block_until_ready(prepare_params(w1, b1, w2, b2))

    fwd = jax.jit(hybrid_embed_forward, static_argnames=("embed_dim", "tm"))
    y = jax.block_until_ready(fwd(x, w1_p, b1_p, w2_p, b2_p, embed_dim=embed_dim))

    y_ref = reference_forward(x, w1, b1, w2, b2)
    assert y.shape == (B, (H // 2) * (W // 2), embed_dim), y.shape
    # bf16 operands / bf16 output with f32 accumulation vs f32 reference.
    err = float(jnp.max(jnp.abs(y.astype(jnp.float32) - y_ref)))
    assert jnp.allclose(y.astype(jnp.float32), y_ref, atol=3e-2, rtol=3e-2), err

    print("KERNEL_OK")
</pallas_src>

<mosaic_0001>
module attributes {stable_mosaic.version = 11 : i64} {
  func.func @hybrid_embed_kernel(%arg0: i32, %arg1: memref<64x16xbf16, #tpu.memory_space<vmem>>, %arg2: memref<16x128xbf16, #tpu.memory_space<vmem>>, %arg3: memref<1x128xf32, #tpu.memory_space<vmem>>, %arg4: memref<128x128xbf16, #tpu.memory_space<vmem>>, %arg5: memref<1x128xf32, #tpu.memory_space<vmem>>, %arg6: memref<64x128xbf16, #tpu.memory_space<vmem>>) attributes {dimension_semantics = [#tpu.dimension_semantics<parallel>], iteration_bounds = array<i64: 2>, scalar_prefetch = 0 : i64, scratch_operands = 0 : i64, tpu.core_type = #tpu.core_type<tc>, window_params = [{transform_indices = @transform_0, window_bounds = array<i64: 64, 16>}, {pipeline_mode = #tpu.pipeline_mode<synchronous>, transform_indices = @transform_1, window_bounds = array<i64: 16, 128>}, {pipeline_mode = #tpu.pipeline_mode<synchronous>, transform_indices = @transform_2, window_bounds = array<i64: 1, 128>}, {pipeline_mode = #tpu.pipeline_mode<synchronous>, transform_indices = @transform_3, window_bounds = array<i64: 128, 128>}, {pipeline_mode = #tpu.pipeline_mode<synchronous>, transform_indices = @transform_4, window_bounds = array<i64: 1, 128>}, {transform_indices = @transform_5, window_bounds = array<i64: 64, 128>}]} {
    %c0 = arith.constant 0 : index
    %c0_0 = arith.constant 0 : index
    %0 = vector.load %arg1[%c0, %c0_0] : memref<64x16xbf16, #tpu.memory_space<vmem>>, vector<64x16xbf16>
    %c0_1 = arith.constant 0 : index
    %c0_2 = arith.constant 0 : index
    %1 = vector.load %arg2[%c0_1, %c0_2] : memref<16x128xbf16, #tpu.memory_space<vmem>>, vector<16x128xbf16>
    %cst = arith.constant dense<0.000000e+00> : vector<64x128xf32>
    %2 = tpu.matmul %0, %1, %cst {dimension_numbers = #tpu.dot_dimension_numbers<[1], [0], [0], [1], [0, 0, 1, 1], [], []>} : vector<64x16xbf16>, vector<16x128xbf16>, vector<64x128xf32> -> vector<64x128xf32>
    %c0_3 = arith.constant 0 : index
    %c0_4 = arith.constant 0 : index
    %3 = vector.load %arg3[%c0_3, %c0_4] : memref<1x128xf32, #tpu.memory_space<vmem>>, vector<1x128xf32>
    %4 = vector.broadcast %3 : vector<1x128xf32> to vector<64x128xf32>
    %5 = arith.addf %2, %4 : vector<64x128xf32>
    %cst_5 = arith.constant 0.000000e+00 : f32
    %6 = vector.broadcast %cst_5 : f32 to vector<64x128xf32>
    %7 = arith.maximumf %5, %6 : vector<64x128xf32>
    %8 = arith.truncf %7 : vector<64x128xf32> to vector<64x128xbf16>
    %c0_6 = arith.constant 0 : index
    %c0_7 = arith.constant 0 : index
    %9 = vector.load %arg4[%c0_6, %c0_7] : memref<128x128xbf16, #tpu.memory_space<vmem>>, vector<128x128xbf16>
    %cst_8 = arith.constant dense<0.000000e+00> : vector<64x128xf32>
    %10 = tpu.matmul %8, %9, %cst_8 {dimension_numbers = #tpu.dot_dimension_numbers<[1], [0], [0], [1], [0, 0, 1, 1], [], []>} : vector<64x128xbf16>, vector<128x128xbf16>, vector<64x128xf32> -> vector<64x128xf32>
    %c0_9 = arith.constant 0 : index
    %c0_10 = arith.constant 0 : index
    %11 = vector.load %arg5[%c0_9, %c0_10] : memref<1x128xf32, #tpu.memory_space<vmem>>, vector<1x128xf32>
    %12 = vector.broadcast %11 : vector<1x128xf32> to vector<64x128xf32>
    %13 = arith.addf %10, %12 : vector<64x128xf32>
    %14 = arith.truncf %13 : vector<64x128xf32> to vector<64x128xbf16>
    %c0_11 = arith.constant 0 : index
    %c0_12 = arith.constant 0 : index
    %15 = vector.load %arg6[%c0_11, %c0_12] : memref<64x128xbf16, #tpu.memory_space<vmem>>, vector<64x128xbf16>
    tpu.vector_store %arg6[%c0_11, %c0_12], %14 {strides = array<i32>} : memref<64x128xbf16, #tpu.memory_space<vmem>>, vector<64x128xbf16>,
    return
  }
  func.func @transform_0(%arg0: i32) -> (i32, i32) {
    %c0_i32 = arith.constant 0 : i32
    %c0_i32_0 = arith.constant 0 : i32
    return %arg0, %c0_i32 : i32, i32
  }
  func.func @transform_1(%arg0: i32) -> (i32, i32) {
    %c0_i32 = arith.constant 0 : i32
    %c0_i32_0 = arith.constant 0 : i32
    %c0_i32_1 = arith.constant 0 : i32
    return %c0_i32, %c0_i32_0 : i32, i32
  }
  func.func @transform_2(%arg0: i32) -> (i32, i32) {
    %c0_i32 = arith.constant 0 : i32
    %c0_i32_0 = arith.constant 0 : i32
    %c0_i32_1 = arith.constant 0 : i32
    return %c0_i32, %c0_i32_0 : i32, i32
  }
  func.func @transform_3(%arg0: i32) -> (i32, i32) {
    %c0_i32 = arith.constant 0 : i32
    %c0_i32_0 = arith.constant 0 : i32
    %c0_i32_1 = arith.constant 0 : i32
    return %c0_i32, %c0_i32_0 : i32, i32
  }
  func.func @transform_4(%arg0: i32) -> (i32, i32) {
    %c0_i32 = arith.constant 0 : i32
    %c0_i32_0 = arith.constant 0 : i32
    %c0_i32_1 = arith.constant 0 : i32
    return %c0_i32, %c0_i32_0 : i32, i32
  }
  func.func @transform_5(%arg0: i32) -> (i32, i32) {
    %c0_i32 = arith.constant 0 : i32
    %c0_i32_0 = arith.constant 0 : i32
    return %arg0, %c0_i32 : i32, i32
  }
}

</mosaic_0001>

<bundles_post_ra>
// kernel: hybrid_embed_forward.1
= control target key start
LH: loop header
LB: loop body
LE: loop exit
PB: predicated region body
PF: predicated region fallthrough
CT: control target
= control target key end

     0   :  { %s789_s18 = smov 0   ;;  %s850_s0 = inlined_call_operand.vmem [shape: bf16[128,16], index: 0, kind: input, shape index: {}]   ;;  %s851_s1 = inlined_call_operand.vmem [shape: bf16[16,128], index: 1, kind: input, shape index: {}]   ;;  %s852_s2 = inlined_call_operand.vmem [shape: f32[1,128], index: 2, kind: input, shape index: {}]   ;;  %s853_s3 = inlined_call_operand.vmem [shape: bf16[128,128], index: 3, kind: input, shape index: {}]   ;;  %s854_s4 = inlined_call_operand.vmem [shape: f32[1,128], index: 4, kind: input, shape index: {}]   ;;  %s855_s5 = inlined_call_operand.vmem [shape: bf16[128,128], index: 5, kind: output, shape index: {}]  }
   0x1 LB: > { %s594_s19 = sadd.s32 4294967295, %s757_s18   ;;  %p598_p0 = scmp.ge.s32.totalorder %s757_s18, 1  ;;  %s757_s18 = sphi %s789_s18, %s15_s18  }
   0x2   : > { %p188_p1 = scmp.lt.s32.totalorder %s757_s18, 3 }
   0x4   : > { %p189_p2 = pnand %p598_p0, %p188_p1 }
   0x5   : > { %s599_s22 = sshll.u32 (!%p189_p2), %s594_s19, 3 }
   0x6   : > { %192 = sbr.rel (%p189_p2) target bundleno = 434 (0x1b2), region = 40  ;;  %p217_p3 = scmp.lt.s32.totalorder (!%p189_p2), %s599_s22, 15 }
   0xb   : > { %v738_v0 = vld [vmem:[%s851_s1] sm:$0xff]   ;;  %v743_v1 = vld [vmem:[%s853_s3 + $0x38] sm:$0xff]   ;;  %s857_s22 = smov (!%p217_p3, %s599_s22), 15  ;;  %v744_v2 = vld [vmem:[%s853_s3 + $0x30] sm:$0xff]   ;;  %vm272_vm0 = vcmask 130048  }
   0xc   : > { %680 = vmatprep.subr.bf16.mxu0 %v738_v0  ;;  %714 = vmatprep.subr.bf16.mxu1 %v743_v1  ;;  %s600_s27 = sshll.u32 %s857_s22, 2  ;;  %v745_v3 = vld [vmem:[%s853_s3 + $0x28] sm:$0xff]   ;;  %v746_v7 = vld [vmem:[%s853_s3 + $0x20] sm:$0xff]   ;;  %v747_v9 = vld [vmem:[%s853_s3 + $0x18] sm:$0xff]  }
   0xd   : > { %681 = vmatpush3.bf16.msra.mxu0 %v738_v0  ;;  %722 = vmatpush3.bf16.msra.mxu1 %v743_v1  ;;  %s220_s30 = scalar_lea.vmem %s850_s0, %s600_s27  ;;  %v748_v10 = vld [vmem:[%s853_s3 + $0x10] sm:$0xff]   ;;  %v749_v11 = vld [vmem:[%s853_s3 + $0x8] sm:$0xff]   ;;  %v750_v12 = vld [vmem:[%s853_s3] sm:$0xff]   ;;  %s226_s26 = scalar_lea.vmem %s855_s5, %s600_s27 }
   0xe   : > { %690 = vmatprep.subr.bf16.mxu0 %v743_v1  ;;  %715 = vmatprep.subr.bf16.mxu1 %v744_v2  ;;  %v739_v4 = vld [vmem:[%s220_s30] sm:$0xff]   ;;  %v740_v5 = vld [vmem:[%s220_s30 + $0x8] sm:$0xff]   ;;  %v741_v6 = vld [vmem:[%s220_s30 + $0x10] sm:$0xff]  }
   0xf   : > { %682 = vmatprep.mubr.msk.bf16.mxu0 %vm272_vm0, %v739_v4  ;;  %v742_v8 = vld [vmem:[%s220_s30 + $0x18] sm:$0xff]   ;;  %v603_v15 = vld [vmem:[%s852_s2] ss:$0 sm:$0xff] }
  0x10   : > { %683 = vmatmul.mubr.msk.bf16.vlgmr.msra.gmra.mxu0 %vm272_vm0, %v740_v5  ;;  %v613_v43 = vld [vmem:[%s854_s4] ss:$0 sm:$0xff] }
  0x11   : > { %723 = vmatpush3.bf16.msra.mxu1 %v744_v2  ;;  %686 = vmatprep.mubr.msk.bf16.mxu0 %vm272_vm0, %v741_v6 }
  0x12   : > { %716 = vmatprep.subr.bf16.mxu1 %v745_v3  ;;  %691 = vmatpush3.bf16.msra.mxu0 %v743_v1 }
  0x13   : > { %692 = vmatprep.subr.bf16.mxu0 %v744_v2 }
  0x15   : > { %724 = vmatpush3.bf16.msra.mxu1 %v745_v3 }
  0x16   : > { %717 = vmatprep.subr.bf16.mxu1 %v746_v7  ;;  %693 = vmatpush3.bf16.msra.mxu0 %v744_v2 }
  0x17   : > { %694 = vmatprep.subr.bf16.mxu0 %v745_v3 }
  0x18   : > { %687 = vmatmul.mubr.msk.bf16.gmra.mxu0 %vm272_vm0, %v742_v8 }
  0x19   : > { %725 = vmatpush3.bf16.msra.mxu1 %v746_v7 }
  0x1a   : > { %718 = vmatprep.subr.bf16.mxu1 %v747_v9  ;;  %695 = vmatpush3.bf16.msra.mxu0 %v745_v3 }
  0x1b   : > { %696 = vmatprep.subr.bf16.mxu0 %v746_v7 }
  0x1d   : > { %726 = vmatpush3.bf16.msra.mxu1 %v747_v9 }
  0x1e   : > { %697 = vmatpush3.bf16.msra.mxu0 %v746_v7  ;;  %719 = vmatprep.subr.bf16.mxu1 %v748_v10 }
  0x1f   : > { %698 = vmatprep.subr.bf16.mxu0 %v747_v9 }
  0x21   : > { %727 = vmatpush3.bf16.msra.mxu1 %v748_v10 }
  0x22   : > { %699 = vmatpush3.bf16.msra.mxu0 %v747_v9  ;;  %720 = vmatprep.subr.bf16.mxu1 %v749_v11 }
  0x23   : > { %700 = vmatprep.subr.bf16.mxu0 %v748_v10 }
  0x25   : > { %728 = vmatpush3.bf16.msra.mxu1 %v749_v11 }
  0x26   : > { %701 = vmatpush3.bf16.msra.mxu0 %v748_v10  ;;  %721 = vmatprep.subr.bf16.mxu1 %v750_v12 }
  0x27   : > { %702 = vmatprep.subr.bf16.mxu0 %v749_v11 }
  0x29   : > { %729 = vmatpush3.bf16.msra.mxu1 %v750_v12 }
  0x2a   : > { %703 = vmatpush3.bf16.msra.mxu0 %v749_v11 }
  0x2b   : > { %704 = vmatprep.subr.bf16.mxu0 %v750_v12 }
  0x2e   : > { %705 = vmatpush3.bf16.msra.mxu0 %v750_v12 }
  0xd0   : > { %v684_v13 = vpop.f32.mrf.mxu0 }
  0xd1   : > { %v328_v19 = vadd.f32 %v684_v13, %v603_v15 }
  0xd2   : > { %v319_v14 = vpop.f32.mrf.mxu0 }
  0xd3   : > { %v320_v17 = vadd.f32 %v603_v15, %v319_v14  ;;  %v352_v26 = vmax.f32 %v328_v19, 0.0 }
  0xd4   : > { %v685_v16 = vpop.f32.mrf.mxu0 }
  0xd5   : > { %v331_v18 = vadd.f32 %v685_v16, %v603_v15  ;;  %v350_v24 = vmax.f32 %v320_v17, 0.0 }
  0xd6   : > { %v322_v20 = vpop.f32.mrf.mxu0 }
  0xd7   : > { %v323_v21 = vadd.f32 %v603_v15, %v322_v20  ;;  %v353_v22 = vmax.f32 %v331_v18, 0.0 }
  0xd8   : > { %v688_v23 = vpop.f32.mrf.mxu0 }
  0xd9   : > { %v351_v25 = vmax.f32 %v323_v21, 0.0  ;;  %v359_v29 = vpack.c.bf16 %v353_v22, %v352_v26  ;;  %v344_v33 = vadd.f32 %v688_v23, %v603_v15 }
  0xda   : > { %v335_v27 = vpop.f32.mrf.mxu0 }
  0xdb   : > { %v358_v28 = vpack.c.bf16 %v351_v25, %v350_v24  ;;  %v336_v31 = vadd.f32 %v603_v15, %v335_v27  ;;  %v356_v39 = vmax.f32 %v344_v33, 0.0 }
  0xdc   : > { %v689_v30 = vpop.f32.mrf.mxu0 }
  0xdd   : > { %v347_v32 = vadd.f32 %v689_v30, %v603_v15  ;;  %706 = vmatprep.mubr.bf16.mxu0 %v358_v28  ;;  %v354_v37 = vmax.f32 %v336_v31, 0.0 }
  0xde   : > { %v338_v34 = vpop.f32.mrf.mxu0  ;;  %707 = vmatmul.mubr.bf16.vlgmr.msra.gmra.mxu0 %v359_v29 }
  0xdf   : > { %v339_v35 = vadd.f32 %v603_v15, %v338_v34  ;;  %v357_v36 = vmax.f32 %v347_v32, 0.0 }
  0xe1   : > { %v355_v38 = vmax.f32 %v339_v35, 0.0  ;;  %v361_v41 = vpack.c.bf16 %v357_v36, %v356_v39 }
  0xe3   : > { %v360_v40 = vpack.c.bf16 %v355_v38, %v354_v37 }
  0xe5   : > { %710 = vmatprep.mubr.bf16.mxu1 %v360_v40 }
  0xe6   : > { %711 = vmatmul.mubr.bf16.vlgmr.msra.gmra.mxu1 %v361_v41 }
 0x19e   : > { %v708_v42 = vpop.f32.mrf.mxu0 }
 0x19f   : > { %v476_v46 = vadd.f32 %v708_v42, %v613_v43 }
 0x1a0   : > { %v467_v44 = vpop.f32.mrf.mxu0 }
 0x1a1   : > { %v468_v49 = vadd.f32 %v613_v43, %v467_v44 }
 0x1a2   : > { %v709_v45 = vpop.f32.mrf.mxu0 }
 0x1a3   : > { %v479_v47 = vadd.f32 %v709_v45, %v613_v43 }
 0x1a4   : > { %v470_v48 = vpop.f32.mrf.mxu0 }
 0x1a5   : > { %v648_v50 = vpack.c.bf16 %v479_v47, %v476_v46  ;;  %v471_v51 = vadd.f32 %v613_v43, %v470_v48 }
 0x1a6   : > { %v712_v52 = vpop.f32.mrf.mxu1 }
 0x1a7   : > { %660 = vst [vmem:[%s226_s26 + $0x8] sm:$0xff] %v648_v50   ;;  %v643_v53 = vpack.c.bf16 %v471_v51, %v468_v49  ;;  %v492_v56 = vadd.f32 %v712_v52, %v613_v43 }
 0x1a8   : > { %v483_v54 = vpop.f32.mrf.mxu1 }
 0x1a9   : > { %644 = vst [vmem:[%s226_s26] sm:$0xff] %v643_v53   ;;  %v484_v59 = vadd.f32 %v613_v43, %v483_v54 }
 0x1aa   : > { %v713_v55 = vpop.f32.mrf.mxu1 }
 0x1ab   : > { %v495_v57 = vadd.f32 %v713_v55, %v613_v43 }
 0x1ac   : > { %v486_v58 = vpop.f32.mrf.mxu1 }
 0x1ad   : > { %v658_v60 = vpack.c.bf16 %v495_v57, %v492_v56  ;;  %v487_v61 = vadd.f32 %v613_v43, %v486_v58 }
 0x1af   : > { %662 = vst [vmem:[%s226_s26 + $0x18] sm:$0xff] %v658_v60   ;;  %v653_v62 = vpack.c.bf16 %v487_v61, %v484_v59 }
 0x1b1   : > { %661 = vst [vmem:[%s226_s26 + $0x10] sm:$0xff] %v653_v62  }
 0x1b2 PF: > { %s15_s18 = sadd.s32 1, %s757_s18  }
 0x1b3   : > { %p12_p4 = scmp.ge.s32.totalorder %s15_s18, 4  }
 0x1b5   :  { %14 = sbr.rel (!%p12_p4) target bundleno = 1 (0x1), region = 70 }

</bundles_post_ra>
